<compile_context>
chip_gen: v6e
topology: v6e:2x2x1
jax: 0.10.0
libtpu: 0.0.40
codegen_flags: <defaults>
</compile_context>

<pallas_src>
import functools

import jax
import jax.numpy as jnp
from jax.experimental import pallas as pl
from jax.experimental.pallas import tpu as pltpu

_INV_SQRT2 = 0.7071067811865476
_SQRT_2_OVER_PI = 0.7978845608028654
_LANE = 128


def _geglu_kernel(x_ref, wh_ref, wg_ref, bh_ref, bg_ref, o_ref, *, approximate):
    # x_ref : (tm, dim_in)   row tile of flattened hidden_states
    # wh_ref: (dim_in, tn)   "value"-half weight column tile
    # wg_ref: (dim_in, tn)   "gate"-half  weight column tile
    # bh_ref/bg_ref: (1, tn) bias column tiles
    # o_ref : (tm, tn)
    x = x_ref[...]  # native dtype straight into the MXU (bf16 fast path), f32 accumulate
    h = jnp.dot(x, wh_ref[...], preferred_element_type=jnp.float32)
    g = jnp.dot(x, wg_ref[...], preferred_element_type=jnp.float32)
    h = h + bh_ref[...].astype(jnp.float32)
    g = g + bg_ref[...].astype(jnp.float32)
    if approximate:
        # tanh-GELU: tanh runs on the EUP slot, leaving the VALU free (opt-in, changes
        # numerics vs F.gelu(approximate='none')).
        inner = _SQRT_2_OVER_PI * (g + 0.044715 * (g * g * g))
        gelu_g = 0.5 * g * (1.0 + jnp.tanh(inner))
    else:
        # exact GELU: 0.5 * g * (1 + erf(g / sqrt(2))) — matches F.gelu's default.
        gelu_g = 0.5 * g * (1.0 + jax.lax.erf(g * _INV_SQRT2))
    o_ref[...] = (h * gelu_g).astype(o_ref.dtype)


def _round_up(a, b):
    return (a + b - 1) // b * b


def _vmem_capacity_bytes():
    try:
        cap = int(pltpu.get_tpu_info().vmem_capacity_bytes)
        if cap > 0:
            return cap
    except Exception:
        pass
    return 64 * 1024 * 1024  # conservative (v7x-sized) fallback


def _select_tiles(M, dim_in, dim_out_p, x_bytes, w_bytes, o_bytes, budget, tm_req, tn_req):
    """Pick (tm, tn): tn = widest lane-aligned divisor of dim_out_p whose working set
    fits the VMEM budget with a reasonable row tile; prefer weight-resident (nt==1) or
    even column-tile counts (v7x megacore balance)."""
    m_cap = _round_up(max(M, 1), 16)
    desired_tm = tm_req if tm_req is not None else 512
    desired_tm = max(16, min(_round_up(desired_tm, 16), m_cap))

    tm_cands = []
    t = desired_tm
    while t >= 16:
        tm_cands.append(t)
        t = (t // 2) // 16 * 16
    if tm_cands[-1] != 16:
        tm_cands.append(16)

    if tn_req is not None and tn_req % _LANE == 0 and dim_out_p % tn_req == 0:
        tn_cands = [tn_req]
    else:
        tn_cands = [t for t in range(dim_out_p, 0, -_LANE) if dim_out_p % t == 0]

    def vmem_need(tm, tn):
        x_buf = 2 * tm * dim_in * x_bytes          # double-buffered x tile
        w_buf = 4 * dim_in * tn * w_bytes          # 2 halves x double buffer
        b_buf = 4 * tn * w_bytes
        o_buf = 2 * tm * tn * o_bytes
        interm = 3 * tm * tn * 4                   # f32 h / g / gelu live values
        return x_buf + w_buf + b_buf + o_buf + interm

    tm_floor = min(128, desired_tm)
    acceptable = []   # (tn, tm) with tm >= tm_floor, widest tn first
    fallback = None
    for tn in tn_cands:
        fit_tm = None
        for tm in tm_cands:
            if vmem_need(tm, tn) <= budget:
                fit_tm = tm
                break
        if fit_tm is None:
            continue
        if fit_tm >= tm_floor:
            acceptable.append((tn, fit_tm))
        elif fallback is None:
            fallback = (tn, fit_tm)

    if acceptable:
        for tn, tm in acceptable:
            nt = dim_out_p // tn
            if nt == 1 or nt % 2 == 0:             # weight-resident or even split (v7x)
                return tm, tn
        return acceptable[0][1], acceptable[0][0]
    if fallback is not None:
        return fallback[1], fallback[0]
    return tm_cands[-1], tn_cands[-1]


@functools.partial(jax.jit, static_argnames=("approximate", "tm", "tn"))
def geglu(x, weight, bias, *, approximate=False, tm=None, tn=None):
    """GEGLU forward.

    x:      [..., dim_in]
    weight: [dim_in, 2*dim_out]   (PyTorch stores [2*dim_out, dim_in]; pass transposed)
    bias:   [2*dim_out]
    returns [..., dim_out]

    `scale` of LoRACompatibleLinear is a no-op without LoRA and is not an argument here.
    """
    *lead, dim_in = x.shape
    two_dim_out = weight.shape[1]
    dim_out = two_dim_out // 2

    M = 1
    for s in lead:
        M *= s
    x2 = x.reshape(M, dim_in)

    # Lane-align dim_out; when padding is needed, pad to a multiple of 256 so tn >= 256
    # keeps the 256-wide MXU full (real animatediff dims are already 128-aligned).
    if dim_out % _LANE == 0:
        dim_out_p = dim_out
    else:
        dim_out_p = _round_up(dim_out, 2 * _LANE)

    cap = _vmem_capacity_bytes()
    budget = int(cap * 0.45)          # ~57 MiB on v5e/v6e, ~28 MiB on v7x
    vmem_limit = int(cap * 0.75)

    x_bytes = jnp.dtype(x.dtype).itemsize
    w_bytes = jnp.dtype(weight.dtype).itemsize
    o_bytes = x_bytes
    tm_sel, tn_sel = _select_tiles(M, dim_in, dim_out_p, x_bytes, w_bytes, o_bytes,
                                   budget, tm, tn)

    # Row padding instead of asserting divisibility (also keeps bf16 sublane tiles full).
    m_pad = _round_up(max(M, 1), tm_sel)
    if m_pad != M:
        x2 = jnp.pad(x2, ((0, m_pad - M), (0, 0)))

    if dim_out_p == dim_out:
        # No copies: the h / g halves are addressed purely via BlockSpec index maps.
        w2 = weight
        b2 = bias.reshape(1, two_dim_out)
    else:
        # Only for small / non-128-aligned dim_out (never real animatediff FFN shapes).
        w2 = jnp.zeros((dim_in, 2 * dim_out_p), dtype=weight.dtype)
        w2 = w2.at[:, :dim_out].set(weight[:, :dim_out])
        w2 = w2.at[:, dim_out_p:dim_out_p + dim_out].set(weight[:, dim_out:])
        b2 = jnp.zeros((1, 2 * dim_out_p), dtype=bias.dtype)
        b2 = b2.at[:, :dim_out].set(bias[:dim_out])
        b2 = b2.at[:, dim_out_p:dim_out_p + dim_out].set(bias[dim_out:])

    n_tiles = dim_out_p // tn_sel
    m_tiles = m_pad // tm_sel

    kernel = functools.partial(_geglu_kernel, approximate=approximate)

    if n_tiles == 1:
        # Weight-resident fast path: both halves stay in VMEM for the whole call; x, W
        # and the output each cross HBM exactly once; 1-D row grid (megacore-shardable).
        # (pipeline_mode=pl.Buffered(1) on the weight specs would halve their VMEM
        #  footprint; kept at the default double buffer for portability — the budget
        #  above already accounts for two buffers.)
        grid = (m_tiles,)
        in_specs = [
            pl.BlockSpec((tm_sel, dim_in), lambda i: (i, 0)),   # x rows
            pl.BlockSpec((dim_in, tn_sel), lambda i: (0, 0)),   # W, value half (resident)
            pl.BlockSpec((dim_in, tn_sel), lambda i: (0, 1)),   # W, gate half  (resident)
            pl.BlockSpec((1, tn_sel), lambda i: (0, 0)),        # b, value half
            pl.BlockSpec((1, tn_sel), lambda i: (0, 1)),        # b, gate half
        ]
        out_specs = pl.BlockSpec((tm_sel, tn_sel), lambda i: (i, 0))
        dims = ("parallel",)
    else:
        g_off = n_tiles  # block-index offset of the gate half inside w2/b2
        # Rows innermost: weight/bias tiles keep the same block index across consecutive
        # steps -> each weight column tile is DMA'd from HBM exactly once.
        grid = (n_tiles, m_tiles)
        in_specs = [
            pl.BlockSpec((tm_sel, dim_in), lambda j, i: (i, 0)),          # x rows
            pl.BlockSpec((dim_in, tn_sel), lambda j, i: (0, j)),          # W, value half
            pl.BlockSpec((dim_in, tn_sel), lambda j, i: (0, j + g_off)),  # W, gate half
            pl.BlockSpec((1, tn_sel), lambda j, i: (0, j)),               # b, value half
            pl.BlockSpec((1, tn_sel), lambda j, i: (0, j + g_off)),       # b, gate half
        ]
        out_specs = pl.BlockSpec((tm_sel, tn_sel), lambda j, i: (i, j))
        dims = ("parallel", "parallel")

    out = pl.pallas_call(
        kernel,
        out_shape=jax.ShapeDtypeStruct((m_pad, dim_out_p), x.dtype),
        grid_spec=pltpu.PrefetchScalarGridSpec(
            num_scalar_prefetch=0,
            grid=grid,
            in_specs=in_specs,
            out_specs=out_specs,
        ),
        compiler_params=pltpu.CompilerParams(
            dimension_semantics=dims,
            vmem_limit_bytes=vmem_limit),
    )(x2, w2, w2, b2, b2)

    out = out[:M, :dim_out]
    return out.reshape(*lead, dim_out)


def _reference_geglu(x, weight, bias, approximate=False):
    proj = jnp.einsum("...i,io->...o", x.astype(jnp.float32), weight.astype(jnp.float32),
                      precision=jax.lax.Precision.HIGHEST) + bias.astype(jnp.float32)
    h, g = jnp.split(proj, 2, axis=-1)
    return h * jax.nn.gelu(g, approximate=approximate)


if __name__ == "__main__":
    key = jax.random.PRNGKey(0)

    # 1) Small shapes consistent with GEGLU usage inside a transformer FFN block
    #    (exercises the unaligned-dim_out padding + weight-resident 1-D grid path).
    batch, seq, dim_in, dim_out = 2, 8, 32, 32
    kx, kw, kb, k2 = jax.random.split(key, 4)
    x = jax.random.normal(kx, (batch, seq, dim_in), dtype=jnp.float32)
    weight = jax.random.normal(kw, (dim_in, 2 * dim_out), dtype=jnp.float32) * 0.05
    bias = jax.random.normal(kb, (2 * dim_out,), dtype=jnp.float32) * 0.01

    out = jax.block_until_ready(geglu(x, weight, bias))
    ref = _reference_geglu(x, weight, bias)
    assert out.shape == (batch, seq, dim_out)
    assert jnp.allclose(out, ref, atol=1e-5, rtol=1e-5), "f32 small-shape mismatch"

    # 2) Forced multi-tile 2-D grid (2 column tiles x 2 row tiles), f32 operands.
    batch2, seq2, dim_in2, dim_out2 = 2, 256, 128, 256
    ka, kwa, kba = jax.random.split(k2, 3)
    xb2 = jax.random.normal(ka, (batch2, seq2, dim_in2), dtype=jnp.float32)
    wb2 = jax.random.normal(kwa, (dim_in2, 2 * dim_out2), dtype=jnp.float32) * 0.05
    bb2 = jax.random.normal(kba, (2 * dim_out2,), dtype=jnp.float32) * 0.01
    out2 = jax.block_until_ready(geglu(xb2, wb2, bb2, tm=256, tn=128))
    ref2 = _reference_geglu(xb2, wb2, bb2)
    assert jnp.allclose(out2, ref2, atol=1e-4, rtol=1e-4), "f32 multi-tile mismatch"

    # 3) Same shapes with auto tile selection (weight-resident 1-D grid path).
    out2b = jax.block_until_ready(geglu(xb2, wb2, bb2))
    assert jnp.allclose(out2b, ref2, atol=1e-4, rtol=1e-4), "f32 auto-tile mismatch"

    # 4) bf16 fast path: native bf16 operands go straight to the MXU, f32 accumulation.
    xb = xb2.astype(jnp.bfloat16)
    wb = wb2.astype(jnp.bfloat16)
    bb = bb2.astype(jnp.bfloat16)
    out3 = jax.block_until_ready(geglu(xb, wb, bb))
    ref3 = _reference_geglu(xb.astype(jnp.float32), wb.astype(jnp.float32),
                            bb.astype(jnp.float32))
    assert jnp.allclose(out3.astype(jnp.float32), ref3, atol=3e-2, rtol=3e-2), \
        "bf16 mismatch"

    # 5) Opt-in tanh-approximate GELU (EUP epilogue), checked against the tanh reference.
    out4 = jax.block_until_ready(geglu(xb2, wb2, bb2, approximate=True))
    ref4 = _reference_geglu(xb2, wb2, bb2, approximate=True)
    assert jnp.allclose(out4, ref4, atol=1e-4, rtol=1e-4), "tanh-gelu mismatch"

    print("KERNEL_OK")
</pallas_src>

<mosaic_0001>
module attributes {stable_mosaic.version = 11 : i64} {
  func.func @_geglu_kernel(%arg0: i32, %arg1: memref<16x32xf32, #tpu.memory_space<vmem>>, %arg2: memref<32x256xf32, #tpu.memory_space<vmem>>, %arg3: memref<32x256xf32, #tpu.memory_space<vmem>>, %arg4: memref<1x256xf32, #tpu.memory_space<vmem>>, %arg5: memref<1x256xf32, #tpu.memory_space<vmem>>, %arg6: memref<16x256xf32, #tpu.memory_space<vmem>>) attributes {dimension_semantics = [#tpu.dimension_semantics<parallel>], iteration_bounds = array<i64: 1>, scalar_prefetch = 0 : i64, scratch_operands = 0 : i64, tpu.core_type = #tpu.core_type<tc>, window_params = [{transform_indices = @transform_0, window_bounds = array<i64: 16, 32>}, {transform_indices = @transform_1, window_bounds = array<i64: 32, 256>}, {transform_indices = @transform_2, window_bounds = array<i64: 32, 256>}, {transform_indices = @transform_3, window_bounds = array<i64: 1, 256>}, {transform_indices = @transform_4, window_bounds = array<i64: 1, 256>}, {transform_indices = @transform_5, window_bounds = array<i64: 16, 256>}]} {
    %c0 = arith.constant 0 : index
    %c0_0 = arith.constant 0 : index
    %0 = vector.load %arg1[%c0, %c0_0] : memref<16x32xf32, #tpu.memory_space<vmem>>, vector<16x32xf32>
    %c0_1 = arith.constant 0 : index
    %c0_2 = arith.constant 0 : index
    %1 = vector.load %arg2[%c0_1, %c0_2] : memref<32x256xf32, #tpu.memory_space<vmem>>, vector<32x256xf32>
    %cst = arith.constant dense<0.000000e+00> : vector<16x256xf32>
    %2 = tpu.matmul %0, %1, %cst {dimension_numbers = #tpu.dot_dimension_numbers<[1], [0], [0], [1], [0, 0, 1, 1], [], []>} : vector<16x32xf32>, vector<32x256xf32>, vector<16x256xf32> -> vector<16x256xf32>
    %c0_3 = arith.constant 0 : index
    %c0_4 = arith.constant 0 : index
    %3 = vector.load %arg3[%c0_3, %c0_4] : memref<32x256xf32, #tpu.memory_space<vmem>>, vector<32x256xf32>
    %cst_5 = arith.constant dense<0.000000e+00> : vector<16x256xf32>
    %4 = tpu.matmul %0, %3, %cst_5 {dimension_numbers = #tpu.dot_dimension_numbers<[1], [0], [0], [1], [0, 0, 1, 1], [], []>} : vector<16x32xf32>, vector<32x256xf32>, vector<16x256xf32> -> vector<16x256xf32>
    %c0_6 = arith.constant 0 : index
    %c0_7 = arith.constant 0 : index
    %5 = vector.load %arg4[%c0_6, %c0_7] : memref<1x256xf32, #tpu.memory_space<vmem>>, vector<1x256xf32>
    %6 = vector.broadcast %5 : vector<1x256xf32> to vector<16x256xf32>
    %7 = arith.addf %2, %6 : vector<16x256xf32>
    %c0_8 = arith.constant 0 : index
    %c0_9 = arith.constant 0 : index
    %8 = vector.load %arg5[%c0_8, %c0_9] : memref<1x256xf32, #tpu.memory_space<vmem>>, vector<1x256xf32>
    %9 = vector.broadcast %8 : vector<1x256xf32> to vector<16x256xf32>
    %10 = arith.addf %4, %9 : vector<16x256xf32>
    %cst_10 = arith.constant 5.000000e-01 : f32
    %11 = vector.broadcast %cst_10 : f32 to vector<16x256xf32>
    %12 = arith.mulf %11, %10 : vector<16x256xf32>
    %cst_11 = arith.constant 0.707106769 : f32
    %13 = vector.broadcast %cst_11 : f32 to vector<16x256xf32>
    %14 = arith.mulf %10, %13 : vector<16x256xf32>
    %15 = math.erf %14 : vector<16x256xf32>
    %cst_12 = arith.constant 1.000000e+00 : f32
    %16 = vector.broadcast %cst_12 : f32 to vector<16x256xf32>
    %17 = arith.addf %16, %15 : vector<16x256xf32>
    %18 = arith.mulf %12, %17 : vector<16x256xf32>
    %19 = arith.mulf %7, %18 : vector<16x256xf32>
    %c0_13 = arith.constant 0 : index
    %c0_14 = arith.constant 0 : index
    %20 = vector.load %arg6[%c0_13, %c0_14] : memref<16x256xf32, #tpu.memory_space<vmem>>, vector<16x256xf32>
    tpu.vector_store %arg6[%c0_13, %c0_14], %19 {strides = array<i32>} : memref<16x256xf32, #tpu.memory_space<vmem>>, vector<16x256xf32>,
    return
  }
  func.func @transform_0(%arg0: i32) -> (i32, i32) {
    %c0_i32 = arith.constant 0 : i32
    %c0_i32_0 = arith.constant 0 : i32
    return %arg0, %c0_i32 : i32, i32
  }
  func.func @transform_1(%arg0: i32) -> (i32, i32) {
    %c0_i32 = arith.constant 0 : i32
    %c0_i32_0 = arith.constant 0 : i32
    %c0_i32_1 = arith.constant 0 : i32
    return %c0_i32, %c0_i32_0 : i32, i32
  }
  func.func @transform_2(%arg0: i32) -> (i32, i32) {
    %c0_i32 = arith.constant 0 : i32
    %c1_i32 = arith.constant 1 : i32
    %c0_i32_0 = arith.constant 0 : i32
    return %c0_i32, %c1_i32 : i32, i32
  }
  func.func @transform_3(%arg0: i32) -> (i32, i32) {
    %c0_i32 = arith.constant 0 : i32
    %c0_i32_0 = arith.constant 0 : i32
    %c0_i32_1 = arith.constant 0 : i32
    return %c0_i32, %c0_i32_0 : i32, i32
  }
  func.func @transform_4(%arg0: i32) -> (i32, i32) {
    %c0_i32 = arith.constant 0 : i32
    %c1_i32 = arith.constant 1 : i32
    %c0_i32_0 = arith.constant 0 : i32
    return %c0_i32, %c1_i32 : i32, i32
  }
  func.func @transform_5(%arg0: i32) -> (i32, i32) {
    %c0_i32 = arith.constant 0 : i32
    %c0_i32_0 = arith.constant 0 : i32
    return %arg0, %c0_i32 : i32, i32
  }
}

</mosaic_0001>

<bundles_post_ra>
// kernel: geglu.1
= control target key start
LH: loop header
LB: loop body
LE: loop exit
PB: predicated region body
PF: predicated region fallthrough
CT: control target
= control target key end

     0   :  { %v355_v4 = vmov 0.0   ;;  %vm120_vm0 = vcmask 261120   ;;  %v110_v19 = vlaneseq  ;;  %s462_s0 = inlined_call_operand.vmem [shape: f32[16,32], index: 0, kind: input, shape index: {}]   ;;  %s463_s1 = inlined_call_operand.vmem [shape: f32[32,512], index: 1, kind: input, shape index: {}, may-alias: {1,2}]   ;;  %s464_s2 = inlined_call_operand.vmem [shape: f32[32,512], index: 2, kind: input, shape index: {}, may-alias: {1,2}]   ;;  %s465_s3 = inlined_call_operand.vmem [shape: f32[1,512], index: 3, kind: input, shape index: {}, may-alias: {3,4}]   ;;  %s466_s4 = inlined_call_operand.vmem [shape: f32[1,512], index: 4, kind: input, shape index: {}, may-alias: {3,4}]   ;;  %s467_s5 = inlined_call_operand.vmem [shape: f32[16,256], index: 5, kind: output, shape index: {}]  }
   0x1   :  { %v340_v0 = vld [vmem:[%s464_s2 + $0x78] sm:$0xff]  ;;  %v339_v1 = vld [vmem:[%s464_s2 + $0x70] sm:$0xff]  ;;  %280 = vmatprep.mubr.f32.mxu1 %v355_v4  ;;  %191 = vmatprep.mubr.f32.mxu0 %v355_v4  ;;  %v40_v7 = vld [vmem:[%s463_s1 + $0x68] sm:$0xff] }
   0x2   :  { %v338_v2 = vld [vmem:[%s464_s2 + $0x58] sm:$0xff]  ;;  %240 = vmatprep.subr.mxu1 %v340_v0  ;;  %v337_v3 = vld [vmem:[%s464_s2 + $0x50] sm:$0xff]  ;;  %v38_v8 = vld [vmem:[%s463_s1 + $0x60] sm:$0xff]  ;;  %151 = vmatprep.subr.mxu0 %v40_v7  ;;  %v111_v20 = vshrl.u32 %v110_v19, 7 }
   0x3   :  { %241 = vmatpush1.msra.mxu1 %v339_v1  ;;  %v336_v5 = vld [vmem:[%s464_s2 + $0x38] sm:$0xff]  ;;  %v335_v6 = vld [vmem:[%s464_s2 + $0x30] sm:$0xff]  ;;  %v36_v10 = vld [vmem:[%s463_s1 + $0x48] sm:$0xff]  ;;  %152 = vmatpush1.msra.mxu0 %v38_v8 }
   0x4   :  { %242 = vmatprep.subr.mxu1 %v338_v2  ;;  %v334_v9 = vld [vmem:[%s464_s2 + $0x18] sm:$0xff]  ;;  %v34_v11 = vld [vmem:[%s463_s1 + $0x40] sm:$0xff]  ;;  %v333_v12 = vld [vmem:[%s464_s2 + $0x10] sm:$0xff]  ;;  %153 = vmatprep.subr.mxu0 %v36_v10  ;;  %v112_v21 = vsub.s32 0, %v111_v20  ;;  %v116_v23 = vsub.s32 1, %v111_v20 }
   0x5   :  { %243 = vmatpush1.msra.mxu1 %v337_v3  ;;  %v32_v13 = vld [vmem:[%s463_s1 + $0x28] sm:$0xff]  ;;  %v90_v14 = vld [vmem:[%s462_s0] sm:$0xff]  ;;  %154 = vmatpush1.msra.mxu0 %v34_v11 }
   0x6   :  { %244 = vmatprep.subr.mxu1 %v336_v5  ;;  %v30_v15 = vld [vmem:[%s463_s1 + $0x20] sm:$0xff]  ;;  %v28_v16 = vld [vmem:[%s463_s1 + $0x8] sm:$0xff]  ;;  %155 = vmatprep.subr.mxu0 %v32_v13 }
   0x7   :  { %245 = vmatpush1.msra.mxu1 %v335_v6  ;;  %v26_v17 = vld [vmem:[%s463_s1] sm:$0xff]  ;;  %156 = vmatpush1.msra.mxu0 %v30_v15  ;;  %v91_v18 = vld [vmem:[%s462_s0 + $0x8] sm:$0xff] }
   0x8   :  { %246 = vmatprep.subr.mxu1 %v334_v9  ;;  %157 = vmatprep.subr.mxu0 %v28_v16  ;;  %v343_v22 = vld [vmem:[%s466_s4 + $0x2] sm:$0x3]  ;;  %v108_v38 = vld [vmem:[%s465_s3] sm:$0x3] }
   0x9   :  { %247 = vmatpush1.msra.mxu1 %v333_v12  ;;  %158 = vmatpush1.msra.mxu0 %v26_v17  ;;  %v209_v24 = vrot.slane %v343_v22, %v112_v21  ;;  %v213_v25 = vrot.slane %v343_v22, %v116_v23  ;;  %v113_v40 = vrot.slane %v108_v38, %v112_v21 }
   0xa   :  { %344 = vmatmul.mubr.msk.f32.vlgmr.msra.gmra.mxu1 %vm120_vm0, %v90_v14  ;;  %341 = vmatmul.mubr.msk.f32.vlgmr.msra.gmra.mxu0 %vm120_vm0, %v90_v14  ;;  %v117_v43 = vrot.slane %v108_v38, %v116_v23 }
   0xb   :  { %286 = vmatprep.mubr.f32.mxu1 %v355_v4  ;;  %197 = vmatprep.mubr.f32.mxu0 %v355_v4 }
   0xe   :  { %345 = vmatmul.mubr.msk.f32.gmra.mxu1 %vm120_vm0, %v91_v18  ;;  %342 = vmatmul.mubr.msk.f32.gmra.mxu0 %vm120_vm0, %v91_v18 }
  0xca   :  { %v282_v26 = vpop.f32.mrf.mxu1  ;;  %v193_v39 = vpop.f32.mrf.mxu0 }
  0xcb   :  { %v283_v27 = vadd.f32 %v282_v26, %v209_v24  ;;  %v194_v45 = vadd.f32 %v193_v39, %v113_v40 }
  0xcc   :  { %v284_v28 = vpop.f32.mrf.mxu1  ;;  %v195_v41 = vpop.f32.mrf.mxu0 }
  0xcd   :  { %v297_v29 = vmul.f32 0.70710677, %v283_v27  ;;  %v285_v30 = vadd.f32 %v284_v28, %v213_v25  ;;  %v293_v44 = vmul.f32 0.5, %v283_v27  ;;  %v196_v54 = vadd.f32 %v195_v41, %v117_v43 }
  0xce   :  { %v288_v31 = vpop.f32.mrf.mxu1  ;;  %v199_v48 = vpop.f32.mrf.mxu0 }
  0xcf   :  { %347 = verf.f32 %v297_v29  ;;  %v298_v32 = vmul.f32 0.70710677, %v285_v30  ;;  %v289_v33 = vadd.f32 %v288_v31, %v209_v24  ;;  %v294_v49 = vmul.f32 0.5, %v285_v30 }
  0xd0   :  { %v290_v34 = vpop.f32.mrf.mxu1  ;;  %v200_v57 = vadd.f32 %v199_v48, %v113_v40  ;;  %v201_v60 = vpop.f32.mrf.mxu0 }
  0xd1   :  { %349 = verf.f32 %v298_v32  ;;  %v299_v35 = vmul.f32 0.70710677, %v289_v33  ;;  %v291_v36 = vadd.f32 %v290_v34, %v213_v25  ;;  %v295_v53 = vmul.f32 0.5, %v289_v33 }
  0xd2   :  { %v202_v2 = vadd.f32 %v201_v60, %v117_v43 }
  0xd3   :  { %351 = verf.f32 %v299_v35  ;;  %v300_v37 = vmul.f32 0.70710677, %v291_v36  ;;  %v296_v61 = vmul.f32 0.5, %v291_v36 }
  0xd5   :  { %353 = verf.f32 %v300_v37 }
  0xdc   :  { %v348_v42 = vpop.eup %347 }
  0xdd   :  { %v305_v46 = vadd.f32 1.0, %v348_v42 }
  0xde   :  { %v350_v47 = vpop.eup %349 }
  0xdf   :  { %v309_v50 = vmul.f32 %v305_v46, %v293_v44  ;;  %v306_v51 = vadd.f32 1.0, %v350_v47 }
  0xe0   :  { %v352_v52 = vpop.eup %351 }
  0xe1   :  { %v313_v55 = vmul.f32 %v309_v50, %v194_v45  ;;  %v310_v56 = vmul.f32 %v306_v51, %v294_v49  ;;  %v307_v58 = vadd.f32 1.0, %v352_v52 }
  0xe2   :  { %v354_v59 = vpop.eup %353 }
  0xe3   :  { %317 = vst [vmem:[%s467_s5] sm:$0xff] %v313_v55  ;;  %v314_v62 = vmul.f32 %v310_v56, %v196_v54  ;;  %v311_v63 = vmul.f32 %v307_v58, %v295_v53  ;;  %v308_v0 = vadd.f32 1.0, %v354_v59 }
  0xe5   :  { %318 = vst [vmem:[%s467_s5 + $0x8] sm:$0xff] %v314_v62  ;;  %v315_v1 = vmul.f32 %v311_v63, %v200_v57  ;;  %v312_v3 = vmul.f32 %v308_v0, %v296_v61 }
  0xe7   :  { %319 = vst [vmem:[%s467_s5 + $0x10] sm:$0xff] %v315_v1  ;;  %v316_v4 = vmul.f32 %v312_v3, %v202_v2 }
  0xe9   :  { %320 = vst [vmem:[%s467_s5 + $0x18] sm:$0xff] %v316_v4 }

</bundles_post_ra>
